<compile_context>
chip_gen: v7x
topology: tpu7x:2x2x1
jax: 0.10.0
libtpu: 0.0.40
codegen_flags: <defaults>
</compile_context>

<pallas_src>
import jax
import jax.numpy as jnp
from jax import lax
from jax.experimental import pallas as pl
from jax.experimental.pallas import tpu as pltpu

_LANES = 128
_SUBLANES = 8
# 4096-row f32 tile = 2 MiB / stream.  Fits every generation's VMEM budget
# (v7x: 64 MiB/TC physical; worst path uses ~16 MiB of buffers).
_MAX_BLOCK_ROWS = 4096
_VMEM_LIMIT = 32 * 1024 * 1024
_FOLD_STRIP = 256            # rows folded per step inside reduction kernels
_EPS = 1e-12                 # matches mmedit mask_reduce_loss


def _cdiv(a, b):
    return (a + b - 1) // b


def _round_up(a, b):
    return _cdiv(a, b) * b


# ---------------------------------------------------------------------------
# Kernels
# ---------------------------------------------------------------------------
def _sq_err_kernel(p_ref, t_ref, o_ref):
    """(pred - target)^2, computed in f32."""
    d = p_ref[...].astype(jnp.float32) - t_ref[...].astype(jnp.float32)
    o_ref[...] = (d * d).astype(o_ref.dtype)


def _sq_err_w_kernel(p_ref, t_ref, w_ref, o_ref):
    """weight * (pred - target)^2."""
    d = p_ref[...].astype(jnp.float32) - t_ref[...].astype(jnp.float32)
    o_ref[...] = (d * d * w_ref[...].astype(jnp.float32)).astype(o_ref.dtype)


def _row_mask(row0, n_rows, valid_rows):
    """(n_rows, 1) bool: True where the global row index is a real data row."""
    ids = row0 + lax.broadcasted_iota(jnp.int32, (n_rows, 1), 0)
    return ids < valid_rows


def _make_sumsq_kernel(block_rows, valid_rows, row_axis=0):
    """Per-block (8,128) partial sum of (pred-target)^2, strip-folded."""
    ragged = (valid_rows % block_rows) != 0

    def kernel(p_ref, t_ref, lp_ref):
        block_row0 = pl.program_id(row_axis) * block_rows
        acc = jnp.zeros((_SUBLANES, _LANES), jnp.float32)
        for s0 in range(0, block_rows, _FOLD_STRIP):
            n = min(_FOLD_STRIP, block_rows - s0)
            d = (p_ref[pl.ds(s0, n), :].astype(jnp.float32)
                 - t_ref[pl.ds(s0, n), :].astype(jnp.float32))
            sq = d * d
            if ragged:
                sq = jnp.where(_row_mask(block_row0 + s0, n, valid_rows),
                               sq, 0.0)
            # Fold (n,128) -> (8,128): pure VALU vreg adds, no cross-lane op.
            acc = acc + jnp.sum(sq.reshape(-1, _SUBLANES, _LANES), axis=0)
        lp_ref[...] = acc

    return kernel


def _make_wsumsq_kernel(block_rows, valid_rows, row_axis=0):
    """Per-block (8,128) partial sums of w*(p-t)^2 and of w, strip-folded."""
    ragged = (valid_rows % block_rows) != 0

    def kernel(p_ref, t_ref, w_ref, lp_ref, wp_ref):
        block_row0 = pl.program_id(row_axis) * block_rows
        lacc = jnp.zeros((_SUBLANES, _LANES), jnp.float32)
        wacc = jnp.zeros((_SUBLANES, _LANES), jnp.float32)
        for s0 in range(0, block_rows, _FOLD_STRIP):
            n = min(_FOLD_STRIP, block_rows - s0)
            d = (p_ref[pl.ds(s0, n), :].astype(jnp.float32)
                 - t_ref[pl.ds(s0, n), :].astype(jnp.float32))
            w = w_ref[pl.ds(s0, n), :].astype(jnp.float32)
            sq = d * d * w
            if ragged:
                m = _row_mask(block_row0 + s0, n, valid_rows)
                sq = jnp.where(m, sq, 0.0)   # mask sq directly: OOB may be NaN
                w = jnp.where(m, w, 0.0)
            lacc = lacc + jnp.sum(sq.reshape(-1, _SUBLANES, _LANES), axis=0)
            wacc = wacc + jnp.sum(w.reshape(-1, _SUBLANES, _LANES), axis=0)
        lp_ref[...] = lacc
        wp_ref[...] = wacc

    return kernel


# ---------------------------------------------------------------------------
# Layout helpers
# ---------------------------------------------------------------------------
def _slab_rows(count):
    """Row count for a lane-dense (rows, 128) slab holding `count` elements."""
    return _round_up(_cdiv(count, _LANES), _SUBLANES)


def _pick_block_rows(rows):
    return min(_round_up(rows, _SUBLANES), _MAX_BLOCK_ROWS)


def _to_slab(x, rows):
    """Flatten to (rows, 128); pads only if the tail is actually ragged."""
    flat = x.reshape(-1)
    pad = rows * _LANES - flat.shape[0]
    if pad:
        flat = jnp.pad(flat, (0, pad))
    return flat.reshape(rows, _LANES)


def _to_slab_batched(x, batch, rows):
    flat = x.reshape(batch, -1)
    pad = rows * _LANES - flat.shape[1]
    if pad:
        flat = jnp.pad(flat, ((0, 0), (0, pad)))
    return flat.reshape(batch, rows, _LANES)


def _to_plane_slab(x, rows):
    """(N, C or 1, H, W) -> (N, C or 1, rows, 128) per-plane slab."""
    n, c = x.shape[0], x.shape[1]
    flat = x.reshape(n, c, -1)
    pad = rows * _LANES - flat.shape[2]
    if pad:
        flat = jnp.pad(flat, ((0, 0), (0, 0), (0, pad)))
    return flat.reshape(n, c, rows, _LANES)


def _cparams(n_axes):
    return pltpu.CompilerParams(
        dimension_semantics=("parallel",) * n_axes,
        vmem_limit_bytes=_VMEM_LIMIT)


# ---------------------------------------------------------------------------
# Pallas wrappers
# ---------------------------------------------------------------------------
def _elementwise_sq_err_flat(pred, target, weight=None):
    """reduction='none' path (no weight or full-shape weight)."""
    shape, total = pred.shape, pred.size
    rows = _slab_rows(total)
    br = _pick_block_rows(rows)
    grid = (_cdiv(rows, br),)
    spec = pl.BlockSpec((br, _LANES), lambda i: (i, 0))
    out_shape = jax.ShapeDtypeStruct((rows, _LANES), pred.dtype)
    p2, t2 = _to_slab(pred, rows), _to_slab(target, rows)
    if weight is None:
        out = pl.pallas_call(
            _sq_err_kernel, out_shape=out_shape, grid=grid,
            in_specs=[spec, spec], out_specs=spec,
            compiler_params=_cparams(1),
        )(p2, t2)
    else:
        w2 = _to_slab(weight, rows)
        out = pl.pallas_call(
            _sq_err_w_kernel, out_shape=out_shape, grid=grid,
            in_specs=[spec, spec, spec], out_specs=spec,
            compiler_params=_cparams(1),
        )(p2, t2, w2)
    flat = out.reshape(-1)
    if flat.shape[0] != total:
        flat = flat[:total]
    return flat.reshape(shape)


def _elementwise_sq_err_chanw(pred, target, weight):
    """reduction='none' with an (N,1,H,W) mask; mask is never C-broadcast."""
    n, c, h, w = pred.shape
    hw = h * w
    rows = _slab_rows(hw)
    br = _pick_block_rows(rows)
    grid = (_cdiv(rows, br), n, c)                 # c innermost -> mask revisit
    p4, t4 = _to_plane_slab(pred, rows), _to_plane_slab(target, rows)
    w4 = _to_plane_slab(weight, rows)
    data_spec = pl.BlockSpec((None, None, br, _LANES),
                             lambda i, nn, cc: (nn, cc, i, 0))
    wgt_spec = pl.BlockSpec((None, None, br, _LANES),
                            lambda i, nn, cc: (nn, 0, i, 0))
    out = pl.pallas_call(
        _sq_err_w_kernel,
        out_shape=jax.ShapeDtypeStruct((n, c, rows, _LANES), pred.dtype),
        grid=grid,
        in_specs=[data_spec, data_spec, wgt_spec],
        out_specs=data_spec,
        compiler_params=_cparams(3),
    )(p4, t4, w4)
    out = out.reshape(n, c, rows * _LANES)
    if rows * _LANES != hw:
        out = out[..., :hw]
    return out.reshape(pred.shape)


def _sumsq_flat(pred, target):
    """f32 scalar sum((pred-target)^2). No weight stream."""
    total = pred.size
    rows = _slab_rows(total)
    br = _pick_block_rows(rows)
    nb = _cdiv(rows, br)
    p2, t2 = _to_slab(pred, rows), _to_slab(target, rows)
    in_spec = pl.BlockSpec((br, _LANES), lambda i: (i, 0))
    out_spec = pl.BlockSpec((None, _SUBLANES, _LANES), lambda i: (i, 0, 0))
    lp = pl.pallas_call(
        _make_sumsq_kernel(br, rows),
        out_shape=jax.ShapeDtypeStruct((nb, _SUBLANES, _LANES), jnp.float32),
        grid=(nb,),                                   # 1-D: megacore shards nb
        in_specs=[in_spec, in_spec], out_specs=out_spec,
        compiler_params=_cparams(1),
    )(p2, t2)
    return jnp.sum(lp)


def _wsumsq_flat(pred, target, weight):
    """f32 scalars (sum(w*(p-t)^2), sum(w)) over the whole tensor."""
    total = pred.size
    rows = _slab_rows(total)
    br = _pick_block_rows(rows)
    nb = _cdiv(rows, br)
    p2, t2, w2 = (_to_slab(a, rows) for a in (pred, target, weight))
    in_spec = pl.BlockSpec((br, _LANES), lambda i: (i, 0))
    out_spec = pl.BlockSpec((None, _SUBLANES, _LANES), lambda i: (i, 0, 0))
    lp, wp = pl.pallas_call(
        _make_wsumsq_kernel(br, rows),
        out_shape=(jax.ShapeDtypeStruct((nb, _SUBLANES, _LANES), jnp.float32),
                   jax.ShapeDtypeStruct((nb, _SUBLANES, _LANES), jnp.float32)),
        grid=(nb,),
        in_specs=[in_spec, in_spec, in_spec],
        out_specs=(out_spec, out_spec),
        compiler_params=_cparams(1),
    )(p2, t2, w2)
    return jnp.sum(lp), jnp.sum(wp)


def _wsumsq_per_sample(pred, target, weight):
    """f32 (N,) arrays (sum_n(w*(p-t)^2), sum_n(w)) for full-shape weight."""
    n = pred.shape[0]
    per = pred.size // n
    rows = _slab_rows(per)
    br = _pick_block_rows(rows)
    nb = _cdiv(rows, br)
    p3, t3, w3 = (_to_slab_batched(a, n, rows) for a in (pred, target, weight))
    in_spec = pl.BlockSpec((None, br, _LANES), lambda i, b: (b, i, 0))
    out_spec = pl.BlockSpec((None, None, _SUBLANES, _LANES),
                            lambda i, b: (i, b, 0, 0))
    lp, wp = pl.pallas_call(
        _make_wsumsq_kernel(br, rows),
        out_shape=(jax.ShapeDtypeStruct((nb, n, _SUBLANES, _LANES), jnp.float32),
                   jax.ShapeDtypeStruct((nb, n, _SUBLANES, _LANES), jnp.float32)),
        grid=(nb, n),                        # big row axis leads for megacore
        in_specs=[in_spec, in_spec, in_spec],
        out_specs=(out_spec, out_spec),
        compiler_params=_cparams(2),
    )(p3, t3, w3)
    return jnp.sum(lp, axis=(0, 2, 3)), jnp.sum(wp, axis=(0, 2, 3))


def _wsumsq_chanw(pred, target, weight):
    """Per-sample sums with an (N,1,H,W) mask; mask never materialized to C."""
    n, c, h, w = pred.shape
    hw = h * w
    rows = _slab_rows(hw)
    br = _pick_block_rows(rows)
    nb = _cdiv(rows, br)
    p4, t4 = _to_plane_slab(pred, rows), _to_plane_slab(target, rows)
    w4 = _to_plane_slab(weight, rows)
    data_spec = pl.BlockSpec((None, None, br, _LANES),
                             lambda i, nn, cc: (nn, cc, i, 0))
    wgt_spec = pl.BlockSpec((None, None, br, _LANES),
                            lambda i, nn, cc: (nn, 0, i, 0))
    out_spec = pl.BlockSpec((None, None, None, _SUBLANES, _LANES),
                            lambda i, nn, cc: (i, nn, cc, 0, 0))
    lp, wp = pl.pallas_call(
        _make_wsumsq_kernel(br, rows),
        out_shape=(jax.ShapeDtypeStruct((nb, n, c, _SUBLANES, _LANES), jnp.float32),
                   jax.ShapeDtypeStruct((nb, n, c, _SUBLANES, _LANES), jnp.float32)),
        grid=(nb, n, c),                     # c innermost -> weight block revisit
        in_specs=[data_spec, data_spec, wgt_spec],
        out_specs=(out_spec, out_spec),
        compiler_params=_cparams(3),
    )(p4, t4, w4)
    ls = jnp.sum(lp, axis=(0, 2, 3, 4))      # (N,)
    ws = jnp.sum(wp, axis=(0, 2, 3, 4))      # (N,) == sum of C-expanded mask
    return ls, ws


# ---------------------------------------------------------------------------
# Module-level forward (mmedit masked_loss semantics)
# ---------------------------------------------------------------------------
def mse_loss_pallas(pred, target, weight=None, *, loss_weight=1.0,
                    reduction='mean', sample_wise=False):
    """Replicates mmedit MSELoss.forward semantics.

    pred/target: (N, C, H, W).  weight: optional (N, C, H, W) or (N, 1, H, W).
    """
    if reduction not in ('none', 'mean', 'sum'):
        raise ValueError(f'Unsupported reduction mode: {reduction}')

    n = pred.shape[0]
    chan_weight = (weight is not None and pred.ndim == 4
                   and weight.ndim == 4
                   and weight.shape[0] == pred.shape[0]
                   and weight.shape[1] == 1 and pred.shape[1] != 1
                   and weight.shape[2:] == pred.shape[2:])
    if weight is not None and not chan_weight and weight.shape != pred.shape:
        weight = jnp.broadcast_to(weight, pred.shape)   # rare fallback

    if reduction == 'none':
        if weight is None:
            out = _elementwise_sq_err_flat(pred, target)
        elif chan_weight:
            out = _elementwise_sq_err_chanw(pred, target, weight)
        else:
            out = _elementwise_sq_err_flat(pred, target, weight)
        return loss_weight * out

    if weight is None:
        s = _sumsq_flat(pred, target)
        out = s / pred.size if reduction == 'mean' else s
    elif chan_weight:
        ls, ws = _wsumsq_chanw(pred, target, weight)        # per-sample sums
        if reduction == 'sum':
            out = jnp.sum(ls)
        elif sample_wise:
            out = jnp.sum(ls / (ws + _EPS)) / n
        else:
            out = jnp.sum(ls) / (jnp.sum(ws) + _EPS)
    else:
        if reduction == 'sum':
            ls, _ = _wsumsq_flat(pred, target, weight)
            out = ls
        elif sample_wise:
            ls, ws = _wsumsq_per_sample(pred, target, weight)
            out = jnp.sum(ls / (ws + _EPS)) / n
        else:
            ls, ws = _wsumsq_flat(pred, target, weight)
            out = ls / (ws + _EPS)

    return (loss_weight * out).astype(pred.dtype)


class MSELossPallas:
    """JAX/Pallas port of mmedit MSELoss."""

    def __init__(self, loss_weight=1.0, reduction='mean', sample_wise=False):
        if reduction not in ('none', 'mean', 'sum'):
            raise ValueError(f'Unsupported reduction mode: {reduction}')
        self.loss_weight = loss_weight
        self.reduction = reduction
        self.sample_wise = sample_wise

    def __call__(self, pred, target, weight=None):
        return mse_loss_pallas(pred, target, weight,
                               loss_weight=self.loss_weight,
                               reduction=self.reduction,
                               sample_wise=self.sample_wise)


if __name__ == "__main__":
    key = jax.random.PRNGKey(0)
    k1, k2, k3, k4 = jax.random.split(key, 4)
    N, C, H, W = 2, 4, 16, 16
    pred = jax.random.normal(k1, (N, C, H, W), jnp.float32)
    target = jax.random.normal(k2, (N, C, H, W), jnp.float32)
    weight = jax.random.uniform(k3, (N, C, H, W), jnp.float32)
    mask = jax.random.uniform(k4, (N, 1, H, W), jnp.float32)

    def check(got, ref, name):
        got = jax.block_until_ready(got)
        assert jnp.allclose(got, ref, rtol=1e-5, atol=1e-5), (name, got, ref)

    # plain mean / sum (no-weight fast path)
    check(MSELossPallas()(pred, target), jnp.mean((pred - target) ** 2), "mean")
    check(MSELossPallas(reduction='sum')(pred, target),
          jnp.sum((pred - target) ** 2), "sum")

    # weighted mean / sum / sample_wise (full-shape weight)
    sq = weight * (pred - target) ** 2
    check(MSELossPallas()(pred, target, weight),
          jnp.sum(sq) / (jnp.sum(weight) + _EPS), "wmean")
    check(MSELossPallas(reduction='sum')(pred, target, weight), jnp.sum(sq), "wsum")
    ref_sw = jnp.mean(sq.reshape(N, -1).sum(1) /
                      (weight.reshape(N, -1).sum(1) + _EPS))
    check(MSELossPallas(sample_wise=True)(pred, target, weight), ref_sw, "wmean_sw")

    # reduction='none' (no weight / full weight)
    out_none = jax.block_until_ready(MSELossPallas(reduction='none')(pred, target))
    assert out_none.shape == (N, C, H, W)
    check(out_none, (pred - target) ** 2, "none")
    check(MSELossPallas(reduction='none')(pred, target, weight), sq, "none_w")

    # (N,1,H,W) mask path: no broadcast materialization
    mb = jnp.broadcast_to(mask, pred.shape)
    sqm = mb * (pred - target) ** 2
    check(MSELossPallas()(pred, target, mask),
          jnp.sum(sqm) / (jnp.sum(mb) + _EPS), "mask_mean")
    ref_msw = jnp.mean(sqm.reshape(N, -1).sum(1) /
                       (mb.reshape(N, -1).sum(1) + _EPS))
    check(MSELossPallas(sample_wise=True)(pred, target, mask), ref_msw, "mask_mean_sw")
    check(MSELossPallas(reduction='sum')(pred, target, mask), jnp.sum(sqm), "mask_sum")
    check(MSELossPallas(reduction='none')(pred, target, mask), sqm, "mask_none")

    # ragged / lane-tail shapes (exercise the minimal-pad path)
    po = jax.random.normal(k1, (2, 3, 5, 7), jnp.float32)
    to = jax.random.normal(k2, (2, 3, 5, 7), jnp.float32)
    wo = jax.random.uniform(k3, (2, 3, 5, 7), jnp.float32)
    check(MSELossPallas()(po, to), jnp.mean((po - to) ** 2), "odd_mean")
    check(MSELossPallas()(po, to, wo),
          jnp.sum(wo * (po - to) ** 2) / (jnp.sum(wo) + _EPS), "odd_wmean")
    check(MSELossPallas(reduction='none')(po, to), (po - to) ** 2, "odd_none")

    # force the ragged-edge (masked last block) path via a tiny block cap
    _saved = _MAX_BLOCK_ROWS
    globals()['_MAX_BLOCK_ROWS'] = 16
    pr = jax.random.normal(k1, (2, 4, 8, 48), jnp.float32)  # 3072 elems -> 24 rows
    tr = jax.random.normal(k2, (2, 4, 8, 48), jnp.float32)
    wr = jax.random.uniform(k3, (2, 4, 8, 48), jnp.float32)
    check(MSELossPallas()(pr, tr), jnp.mean((pr - tr) ** 2), "ragged_mean")
    check(MSELossPallas()(pr, tr, wr),
          jnp.sum(wr * (pr - tr) ** 2) / (jnp.sum(wr) + _EPS), "ragged_wmean")
    check(MSELossPallas(reduction='none')(pr, tr, wr),
          wr * (pr - tr) ** 2, "ragged_none")
    globals()['_MAX_BLOCK_ROWS'] = _saved

    print("KERNEL_OK")
</pallas_src>

<mosaic_0001>
module attributes {stable_mosaic.version = 11 : i64} {
  func.func @kernel(%arg0: i32, %arg1: memref<16x128xf32, #tpu.memory_space<vmem>>, %arg2: memref<16x128xf32, #tpu.memory_space<vmem>>, %arg3: memref<1x8x128xf32, #tpu.memory_space<vmem>>) attributes {dimension_semantics = [#tpu.dimension_semantics<parallel>], iteration_bounds = array<i64: 1>, scalar_prefetch = 0 : i64, scratch_operands = 0 : i64, tpu.core_type = #tpu.core_type<tc>, window_params = [{transform_indices = @transform_0, window_bounds = array<i64: 16, 128>}, {transform_indices = @transform_1, window_bounds = array<i64: 16, 128>}, {transform_indices = @transform_2, window_bounds = array<i64: 1, 8, 128>}]} {
    %cst = arith.constant 0.000000e+00 : f32
    %0 = vector.broadcast %cst : f32 to vector<8x128xf32>
    %c0 = arith.constant 0 : index
    %c0_0 = arith.constant 0 : index
    %1 = vector.load %arg1[%c0, %c0_0] : memref<16x128xf32, #tpu.memory_space<vmem>>, vector<16x128xf32>
    %c0_1 = arith.constant 0 : index
    %c0_2 = arith.constant 0 : index
    %2 = vector.load %arg2[%c0_1, %c0_2] : memref<16x128xf32, #tpu.memory_space<vmem>>, vector<16x128xf32>
    %3 = arith.subf %1, %2 : vector<16x128xf32>
    %4 = arith.mulf %3, %3 : vector<16x128xf32>
    %5 = vector.shape_cast %4 : vector<16x128xf32> to vector<2x8x128xf32>
    %cst_3 = arith.constant dense<0.000000e+00> : vector<8x128xf32>
    %6 = vector.multi_reduction <add>, %5, %cst_3 [0] : vector<2x8x128xf32> to vector<8x128xf32>
    %7 = arith.addf %0, %6 : vector<8x128xf32>
    %c0_4 = arith.constant 0 : index
    %c0_5 = arith.constant 0 : index
    %c0_6 = arith.constant 0 : index
    %8 = vector.load %arg3[%c0_4, %c0_5, %c0_6] : memref<1x8x128xf32, #tpu.memory_space<vmem>>, vector<1x8x128xf32>
    %9 = vector.shape_cast %8 : vector<1x8x128xf32> to vector<8x128xf32>
    %10 = vector.shape_cast %7 : vector<8x128xf32> to vector<1x8x128xf32>
    tpu.vector_store %arg3[%c0_4, %c0_5, %c0_6], %10 {strides = array<i32>} : memref<1x8x128xf32, #tpu.memory_space<vmem>>, vector<1x8x128xf32>,
    return
  }
  func.func @transform_0(%arg0: i32) -> (i32, i32) {
    %c0_i32 = arith.constant 0 : i32
    %c0_i32_0 = arith.constant 0 : i32
    return %arg0, %c0_i32 : i32, i32
  }
  func.func @transform_1(%arg0: i32) -> (i32, i32) {
    %c0_i32 = arith.constant 0 : i32
    %c0_i32_0 = arith.constant 0 : i32
    return %arg0, %c0_i32 : i32, i32
  }
  func.func @transform_2(%arg0: i32) -> (i32, i32, i32) {
    %c0_i32 = arith.constant 0 : i32
    %c0_i32_0 = arith.constant 0 : i32
    %c0_i32_1 = arith.constant 0 : i32
    return %arg0, %c0_i32, %c0_i32_0 : i32, i32, i32
  }
}

</mosaic_0001>

<bundles_post_ra>
// kernel: tpu_custom_call.1
= control target key start
LH: loop header
LB: loop body
LE: loop exit
PB: predicated region body
PF: predicated region fallthrough
CT: control target
= control target key end

     0   :  { %7 = vsyncpa [#allocation3], 0  ;;  %s200_s0 = inlined_call_operand.hbm [shape: f32[16,128], index: 0, kind: input, shape index: {}]   ;;  %s201_s1 = inlined_call_operand.hbm [shape: f32[16,128], index: 1, kind: input, shape index: {}]   ;;  %s202_s2 = inlined_call_operand.hbm [shape: f32[1,8,128], index: 2, kind: output, shape index: {}]  }
   0x1   :  { %8 = vsyncpa [#allocation6], 0 }
   0x2   :  { %9 = vsyncpa [#allocation4], 0  ;;  %s144_s9 = smov [#allocation2]   ;;  %s72_s13 = scalar_lea.hbm %s200_s0, 256 }
   0x3   :  { %s15_s10 = sshll.u32 %s144_s9, 4  ;;  %p73_p0 = scmp.ne.s32.totalorder %s200_s0, %s72_s13  ;;  %s16_s10 = int_to_ptr.vmem [resolvable:$true] %s15_s10 }
   0x4   :  { %p76_p1 = scmp.lt.u32.totalorder %s72_s13, %s200_s0 }
   0x6   :  { %p78_p2 = pnand %p76_p1, %p73_p0 }
   0x8   :  { %81 = shalt.err (!%p78_p2)
}
   0x9   :  { %s82_s18 = scalar_lea.vmem %s16_s10, 256  ;;  %p87_p4 = scmp.lt.s32.totalorder %s16_s10, %s16_s10 }
   0xa   :  { %p83_p3 = scmp.ne.s32.totalorder %s16_s10, %s82_s18  ;;  %p88_p5 = scmp.lt.s32.totalorder %s82_s18, %s82_s18 }
   0xc   :  { %p89_p6 = por %p88_p5, %p87_p4 }
   0xe   :  { %p90_p7 = pnand %p89_p6, %p83_p3 }
  0x10   :  { %93 = shalt.err (!%p90_p7)
}
  0x11   :  { %s145_s19 = smov 128   ;;  %s146_s20 = smov 8  }
  0x12   :  { %21 = dma.hbm_to_vmem [thread:$0]  %s200_s0, 256, %s16_s10, [#allocation3], %s145_s19, %s145_s19, %s146_s20  }
  0x13   :  { %s147_s23 = smov [#allocation5]   ;;  %s94_s27 = scalar_lea.hbm %s201_s1, 256 }
  0x14   :  { %s27_s24 = sshll.u32 %s147_s23, 4  ;;  %p95_p8 = scmp.ne.s32.totalorder %s201_s1, %s94_s27  ;;  %s28_s24 = int_to_ptr.vmem [resolvable:$true] %s27_s24 }
  0x15   :  { %p98_p9 = scmp.lt.u32.totalorder %s94_s27, %s201_s1 }
  0x17   :  { %p100_p10 = pnand %p98_p9, %p95_p8 }
  0x19   :  { %103 = shalt.err (!%p100_p10)
}
  0x1a   :  { %s104_s4 = scalar_lea.vmem %s28_s24, 256  ;;  %p109_p12 = scmp.lt.s32.totalorder %s28_s24, %s28_s24 }
  0x1b   :  { %p105_p11 = scmp.ne.s32.totalorder %s28_s24, %s104_s4  ;;  %p110_p13 = scmp.lt.s32.totalorder %s104_s4, %s104_s4 }
  0x1d   :  { %p111_p0 = por %p110_p13, %p109_p12 }
  0x1f   :  { %p112_p1 = pnand %p111_p0, %p105_p11 }
  0x21   :  { %115 = shalt.err (!%p112_p1)
}
  0x22   :  { %33 = dma.hbm_to_vmem [thread:$0]  %s201_s1, 256, %s28_s24, [#allocation6], %s145_s19, %s145_s19, %s146_s20  }
  0x23   :  { %138 = dma.done.wait [#allocation3], 256  }
  0x24   :  { %139 = vsyncadd [#allocation3], 4294967040 }
  0x25   :  { %140 = dma.done.wait [#allocation6], 256  }
  0x26   :  { %141 = vsyncadd [#allocation6], 4294967040  ;;  %v40_v0 = vld [vmem:[#allocation2] sm:$0xff]  ;;  %v41_v1 = vld [vmem:[#allocation2 + $0x8] sm:$0xff]  ;;  %s148_s6 = smov [#allocation7]  }
  0x27   :  { %v42_v2 = vld [vmem:[#allocation5] sm:$0xff]  ;;  %v43_v3 = vld [vmem:[#allocation5 + $0x8] sm:$0xff]  ;;  %s57_s7 = sshll.u32 %s148_s6, 4  ;;  %s58_s7 = int_to_ptr.vmem [resolvable:$true] %s57_s7 }
  0x28   :  { %v44_v4 = vsub.f32 %v40_v0, %v42_v2  ;;  %v45_v5 = vsub.f32 %v41_v1, %v43_v3  ;;  %s116_s8 = scalar_lea.vmem %s58_s7, 128  ;;  %p121_p3 = scmp.lt.s32.totalorder %s58_s7, %s58_s7 }
  0x29   :  { %p117_p2 = scmp.ne.s32.totalorder %s58_s7, %s116_s8  ;;  %p122_p4 = scmp.lt.s32.totalorder %s116_s8, %s116_s8 }
  0x2a   :  { %v46_v6 = vmul.f32 %v44_v4, %v44_v4  ;;  %v47_v7 = vmul.f32 %v45_v5, %v45_v5 }
  0x2b   :  { %p123_p5 = por %p122_p4, %p121_p3 }
  0x2c   :  { %v48_v8 = vadd.f32 %v47_v7, %v46_v6 }
  0x2d   :  { %p124_p6 = pnand %p123_p5, %p117_p2 }
  0x2e   :  { %50 = vst [vmem:[#allocation7] sm:$0xff] %v48_v8 }
  0x2f   :  { %127 = shalt.err (!%p124_p6)
}
  0x30   :  { %s128_s10 = scalar_lea.hbm %s202_s2, 128 }
  0x31   :  { %p129_p7 = scmp.ne.s32.totalorder %s202_s2, %s128_s10  ;;  %p132_p8 = scmp.lt.u32.totalorder %s128_s10, %s202_s2 }
  0x33   :  { %p134_p9 = pnand %p132_p8, %p129_p7 }
  0x35   :  { %137 = shalt.err (!%p134_p9)
}
  0x36   :  { %60 = dma.vmem_to_hbm [thread:$0]  %s58_s7, 128, %s202_s2, [#allocation4]  }
  0x37   :  { %142 = dma.done.wait [#allocation4], 128  }
  0x38   :  { %143 = vsyncadd [#allocation4], 4294967168 }
  0x39   :  { %64 = vsyncpa [#allocation3], 1 }
  0x3a   :  { %65 = vsyncpa [#allocation6], 1 }
  0x3b   :  { %66 = vsyncpa [#allocation4], 1 }

</bundles_post_ra>
